<compile_context>
chip_gen: v7x
topology: tpu7x:2x2x1
jax: 0.10.0
libtpu: 0.0.40
codegen_flags: <defaults>
</compile_context>

<pallas_src>
import functools
import math

import jax
import jax.numpy as jnp
from jax.experimental import pallas as pl
from jax.experimental.pallas import tpu as pltpu


LANE = 128  # TPU lane width; feature dims are padded up to a multiple of this.


def _round_up(x, m):
    return (x + m - 1) // m * m


def vae_kernel(x_ref, noise_ref,
               w1_ref, b1_ref, w2_ref, b2_ref,
               w3m_ref, b3m_ref, w3s_ref, b3s_ref,
               w4_ref, b4_ref, w5_ref, b5_ref, w6_ref, b6_ref,
               recon_ref, lat_ref, *, latent_pad):
    """Fused VAE forward on one batch tile: encoder -> reparameterize -> decoder."""
    cdt = w1_ref.dtype  # matmul operand dtype (f32 or bf16); accumulation is f32

    x = x_ref[...]

    # ---- encoder ----
    h = jnp.dot(x, w1_ref[...], preferred_element_type=jnp.float32) + b1_ref[...]
    h = jnp.maximum(h, 0.0)
    h = jnp.dot(h.astype(cdt), w2_ref[...], preferred_element_type=jnp.float32) + b2_ref[...]
    h = jnp.maximum(h, 0.0)
    h = h.astype(cdt)
    # final encoder layer split in two: mu and log_var each lane-0 aligned
    mu = jnp.dot(h, w3m_ref[...], preferred_element_type=jnp.float32) + b3m_ref[...]
    log_var = jnp.dot(h, w3s_ref[...], preferred_element_type=jnp.float32) + b3s_ref[...]

    # ---- reparameterization (all f32 elementwise) ----
    scale = jax.nn.softplus(log_var) + 1e-8          # diagonal of scale_tril
    z = mu + scale * noise_ref[...]                  # dist.rsample()

    # ---- decoder ----
    d = jnp.dot(z.astype(cdt), w4_ref[...], preferred_element_type=jnp.float32) + b4_ref[...]
    d = jnp.maximum(d, 0.0)
    d = jnp.dot(d.astype(cdt), w5_ref[...], preferred_element_type=jnp.float32) + b5_ref[...]
    d = jnp.maximum(d, 0.0)
    recon = jnp.dot(d.astype(cdt), w6_ref[...], preferred_element_type=jnp.float32) + b6_ref[...]

    # ---- lane-dense writeback (all slabs are 128-lane aligned, unmasked stores) ----
    recon_ref[...] = recon
    lat_ref[:, :latent_pad] = z
    lat_ref[:, latent_pad:2 * latent_pad] = mu
    lat_ref[:, 2 * latent_pad:] = scale


# ----------------------------- parameters ----------------------------------


def _init_linear(key, fan_in, fan_out):
    """PyTorch nn.Linear default init; weight returned as [in, out]."""
    kw, kb = jax.random.split(key)
    bound = 1.0 / math.sqrt(fan_in)
    w = jax.random.uniform(kw, (fan_in, fan_out), jnp.float32, minval=-bound, maxval=bound)
    b = jax.random.uniform(kb, (1, fan_out), jnp.float32, minval=-bound, maxval=bound)
    return w, b


def _pad_weight(w, fi_p, fo_p, dtype):
    fi, fo = w.shape
    return jnp.pad(w, ((0, fi_p - fi), (0, fo_p - fo))).astype(dtype)


def _pad_bias(b, fo_p):
    return jnp.pad(b, ((0, 0), (0, fo_p - b.shape[1])))  # biases stay f32


def make_vae_params(key, input_dim, hidden_dim, latent_dim, dtype=jnp.float32):
    """PyTorch-style init, zero-padded to lane multiples once at init time."""
    hid2 = hidden_dim // 2
    in_p = _round_up(input_dim, LANE)
    hid_p = _round_up(hidden_dim, LANE)
    hid2_p = _round_up(hid2, LANE)
    lat_p = _round_up(latent_dim, LANE)

    keys = jax.random.split(key, 6)
    w1, b1 = _init_linear(keys[0], input_dim, hidden_dim)
    w2, b2 = _init_linear(keys[1], hidden_dim, hid2)
    w3, b3 = _init_linear(keys[2], hid2, 2 * latent_dim)   # split into mu / log_var halves
    w4, b4 = _init_linear(keys[3], latent_dim, hid2)
    w5, b5 = _init_linear(keys[4], hid2, hidden_dim)
    w6, b6 = _init_linear(keys[5], hidden_dim, input_dim)

    return (
        _pad_weight(w1, in_p, hid_p, dtype), _pad_bias(b1, hid_p),
        _pad_weight(w2, hid_p, hid2_p, dtype), _pad_bias(b2, hid2_p),
        _pad_weight(w3[:, :latent_dim], hid2_p, lat_p, dtype), _pad_bias(b3[:, :latent_dim], lat_p),
        _pad_weight(w3[:, latent_dim:], hid2_p, lat_p, dtype), _pad_bias(b3[:, latent_dim:], lat_p),
        _pad_weight(w4, lat_p, hid2_p, dtype), _pad_bias(b4, hid2_p),
        _pad_weight(w5, hid2_p, hid_p, dtype), _pad_bias(b5, hid_p),
        _pad_weight(w6, hid_p, in_p, dtype), _pad_bias(b6, in_p),
    )


# ------------------------------- wrapper ------------------------------------


@functools.partial(jax.jit, static_argnames=("latent_dim", "block_batch"))
def vae_forward(x, noise, params, *, latent_dim, block_batch=512):
    (w1, b1, w2, b2, w3m, b3m, w3s, b3s, w4, b4, w5, b5, w6, b6) = params
    batch, input_dim = x.shape
    in_pad, hid_pad = w1.shape
    hid2_pad = w2.shape[1]
    lat_pad = w3m.shape[1]
    cdt = w1.dtype

    # Batch tiling: sublane-aligned tile; batch padded to a whole number of tiles.
    bm = min(block_batch, _round_up(batch, 8))
    padded_batch = _round_up(batch, bm)
    n_blocks = padded_batch // bm

    x_p = jnp.pad(x.astype(cdt), ((0, padded_batch - batch), (0, in_pad - input_dim)))
    noise_p = jnp.pad(noise, ((0, padded_batch - batch), (0, lat_pad - latent_dim)))

    def act_spec(width):
        return pl.BlockSpec((bm, width), lambda i: (i, 0))

    def weight_spec(p):
        return pl.BlockSpec(p.shape, lambda i: (0, 0))   # VMEM-resident across grid

    layer_dims = [(in_pad, hid_pad), (hid_pad, hid2_pad), (hid2_pad, lat_pad),
                  (hid2_pad, lat_pad), (lat_pad, hid2_pad), (hid2_pad, hid_pad),
                  (hid_pad, in_pad)]
    flops = 2 * padded_batch * sum(a * b for a, b in layer_dims)
    param_bytes = sum(int(p.size) * p.dtype.itemsize for p in params)
    io_bytes = (int(x_p.size) * x_p.dtype.itemsize
                + int(noise_p.size) * noise_p.dtype.itemsize
                + padded_batch * in_pad * 4
                + padded_batch * 3 * lat_pad * 4)
    cost = pl.CostEstimate(flops=flops,
                           transcendentals=2 * padded_batch * lat_pad,  # softplus exp/log
                           bytes_accessed=param_bytes + io_bytes)

    recon_p, lat_slab = pl.pallas_call(
        functools.partial(vae_kernel, latent_pad=lat_pad),
        grid=(n_blocks,),
        in_specs=[act_spec(in_pad), act_spec(lat_pad)] + [weight_spec(p) for p in params],
        out_specs=[act_spec(in_pad), act_spec(3 * lat_pad)],
        out_shape=(jax.ShapeDtypeStruct((padded_batch, in_pad), jnp.float32),
                   jax.ShapeDtypeStruct((padded_batch, 3 * lat_pad), jnp.float32)),
        compiler_params=pltpu.CompilerParams(
            dimension_semantics=("parallel",),        # megacore-shard batch tiles (v7x)
            vmem_limit_bytes=32 * 1024 * 1024),
        cost_estimate=cost,
    )(x_p, noise_p, *params)

    recon = recon_p[:batch, :input_dim]
    z = lat_slab[:batch, :latent_dim]
    mu = lat_slab[:batch, lat_pad:lat_pad + latent_dim]
    scale = lat_slab[:batch, 2 * lat_pad:2 * lat_pad + latent_dim]
    return recon, z, mu, scale


# --------------------------- pure-JAX reference ------------------------------


def unpad_params(params, input_dim, hidden_dim, latent_dim):
    hid2 = hidden_dim // 2
    w1, b1, w2, b2, w3m, b3m, w3s, b3s, w4, b4, w5, b5, w6, b6 = params
    f = lambda a, r, c: a[:r, :c].astype(jnp.float32)
    g = lambda a, c: a[:, :c].astype(jnp.float32)
    return (f(w1, input_dim, hidden_dim), g(b1, hidden_dim),
            f(w2, hidden_dim, hid2), g(b2, hid2),
            f(w3m, hid2, latent_dim), g(b3m, latent_dim),
            f(w3s, hid2, latent_dim), g(b3s, latent_dim),
            f(w4, latent_dim, hid2), g(b4, hid2),
            f(w5, hid2, hidden_dim), g(b5, hidden_dim),
            f(w6, hidden_dim, input_dim), g(b6, input_dim))


def vae_reference(x, noise, uparams):
    w1, b1, w2, b2, w3m, b3m, w3s, b3s, w4, b4, w5, b5, w6, b6 = uparams
    h = jax.nn.relu(x @ w1 + b1)
    h = jax.nn.relu(h @ w2 + b2)
    mu = h @ w3m + b3m
    log_var = h @ w3s + b3s
    scale = jax.nn.softplus(log_var) + 1e-8
    z = mu + scale * noise
    d = jax.nn.relu(z @ w4 + b4)
    d = jax.nn.relu(d @ w5 + b5)
    recon = d @ w6 + b6
    return recon, z, mu, scale


if __name__ == "__main__":
    batch, input_dim, hidden_dim, latent_dim = 8, 16, 32, 8

    key = jax.random.PRNGKey(0)
    k_x, k_noise, k_params = jax.random.split(key, 3)
    x = jax.random.normal(k_x, (batch, input_dim), dtype=jnp.float32)
    # Standard-normal noise used by dist.rsample() (reparameterization trick).
    noise = jax.random.normal(k_noise, (batch, latent_dim), dtype=jnp.float32)

    # ---- f32 matmul operands (exact-parity path) ----
    params = make_vae_params(k_params, input_dim, hidden_dim, latent_dim, dtype=jnp.float32)
    recon, z, mu, scale = vae_forward(x, noise, params, latent_dim=latent_dim)
    jax.block_until_ready((recon, z, mu, scale))

    # Mirrors `if z.isnan().any(): print(...)` from the PyTorch module.
    if bool(jnp.isnan(z).any()):
        print("Latent space contains NaNs!")

    r_ref, z_ref, mu_ref, s_ref = vae_reference(
        x, noise, unpad_params(params, input_dim, hidden_dim, latent_dim))
    assert jnp.allclose(recon, r_ref, atol=1e-4, rtol=1e-4)
    assert jnp.allclose(z, z_ref, atol=1e-4, rtol=1e-4)
    assert jnp.allclose(mu, mu_ref, atol=1e-4, rtol=1e-4)
    assert jnp.allclose(scale, s_ref, atol=1e-4, rtol=1e-4)

    # ---- bf16 matmul operands (MXU-native on v6e/v7x); f32 accumulation/elementwise ----
    params16 = make_vae_params(k_params, input_dim, hidden_dim, latent_dim, dtype=jnp.bfloat16)
    recon16, z16, mu16, scale16 = vae_forward(x, noise, params16, latent_dim=latent_dim)
    jax.block_until_ready((recon16, z16, mu16, scale16))
    r16, zz16, mm16, ss16 = vae_reference(
        x, noise, unpad_params(params16, input_dim, hidden_dim, latent_dim))
    assert jnp.allclose(recon16, r16, atol=0.1, rtol=0.1)
    assert jnp.allclose(z16, zz16, atol=0.1, rtol=0.1)
    assert jnp.allclose(scale16, ss16, atol=0.1, rtol=0.1)

    print("KERNEL_OK")
</pallas_src>

<mosaic_0001>
module attributes {stable_mosaic.version = 11 : i64} {
  func.func @vae_kernel(%arg0: i32, %arg1: memref<8x128xf32, #tpu.memory_space<vmem>>, %arg2: memref<8x128xf32, #tpu.memory_space<vmem>>, %arg3: memref<128x128xf32, #tpu.memory_space<vmem>>, %arg4: memref<1x128xf32, #tpu.memory_space<vmem>>, %arg5: memref<128x128xf32, #tpu.memory_space<vmem>>, %arg6: memref<1x128xf32, #tpu.memory_space<vmem>>, %arg7: memref<128x128xf32, #tpu.memory_space<vmem>>, %arg8: memref<1x128xf32, #tpu.memory_space<vmem>>, %arg9: memref<128x128xf32, #tpu.memory_space<vmem>>, %arg10: memref<1x128xf32, #tpu.memory_space<vmem>>, %arg11: memref<128x128xf32, #tpu.memory_space<vmem>>, %arg12: memref<1x128xf32, #tpu.memory_space<vmem>>, %arg13: memref<128x128xf32, #tpu.memory_space<vmem>>, %arg14: memref<1x128xf32, #tpu.memory_space<vmem>>, %arg15: memref<128x128xf32, #tpu.memory_space<vmem>>, %arg16: memref<1x128xf32, #tpu.memory_space<vmem>>, %arg17: memref<8x128xf32, #tpu.memory_space<vmem>>, %arg18: memref<8x384xf32, #tpu.memory_space<vmem>>) attributes {dimension_semantics = [#tpu.dimension_semantics<parallel>], iteration_bounds = array<i64: 1>, scalar_prefetch = 0 : i64, scratch_operands = 0 : i64, tpu.core_type = #tpu.core_type<tc>, window_params = [{transform_indices = @transform_0, window_bounds = array<i64: 8, 128>}, {transform_indices = @transform_1, window_bounds = array<i64: 8, 128>}, {pipeline_mode = #tpu.pipeline_mode<synchronous>, transform_indices = @transform_2, window_bounds = array<i64: 128, 128>}, {pipeline_mode = #tpu.pipeline_mode<synchronous>, transform_indices = @transform_3, window_bounds = array<i64: 1, 128>}, {pipeline_mode = #tpu.pipeline_mode<synchronous>, transform_indices = @transform_4, window_bounds = array<i64: 128, 128>}, {pipeline_mode = #tpu.pipeline_mode<synchronous>, transform_indices = @transform_5, window_bounds = array<i64: 1, 128>}, {pipeline_mode = #tpu.pipeline_mode<synchronous>, transform_indices = @transform_6, window_bounds = array<i64: 128, 128>}, {pipeline_mode = #tpu.pipeline_mode<synchronous>, transform_indices = @transform_7, window_bounds = array<i64: 1, 128>}, {pipeline_mode = #tpu.pipeline_mode<synchronous>, transform_indices = @transform_8, window_bounds = array<i64: 128, 128>}, {pipeline_mode = #tpu.pipeline_mode<synchronous>, transform_indices = @transform_9, window_bounds = array<i64: 1, 128>}, {pipeline_mode = #tpu.pipeline_mode<synchronous>, transform_indices = @transform_10, window_bounds = array<i64: 128, 128>}, {pipeline_mode = #tpu.pipeline_mode<synchronous>, transform_indices = @transform_11, window_bounds = array<i64: 1, 128>}, {pipeline_mode = #tpu.pipeline_mode<synchronous>, transform_indices = @transform_12, window_bounds = array<i64: 128, 128>}, {pipeline_mode = #tpu.pipeline_mode<synchronous>, transform_indices = @transform_13, window_bounds = array<i64: 1, 128>}, {pipeline_mode = #tpu.pipeline_mode<synchronous>, transform_indices = @transform_14, window_bounds = array<i64: 128, 128>}, {pipeline_mode = #tpu.pipeline_mode<synchronous>, transform_indices = @transform_15, window_bounds = array<i64: 1, 128>}, {transform_indices = @transform_16, window_bounds = array<i64: 8, 128>}, {transform_indices = @transform_17, window_bounds = array<i64: 8, 384>}]} {
    %c0 = arith.constant 0 : index
    %c0_0 = arith.constant 0 : index
    %0 = vector.load %arg1[%c0, %c0_0] : memref<8x128xf32, #tpu.memory_space<vmem>>, vector<8x128xf32>
    %c0_1 = arith.constant 0 : index
    %c0_2 = arith.constant 0 : index
    %1 = vector.load %arg3[%c0_1, %c0_2] : memref<128x128xf32, #tpu.memory_space<vmem>>, vector<128x128xf32>
    %cst = arith.constant dense<0.000000e+00> : vector<8x128xf32>
    %2 = tpu.matmul %0, %1, %cst {dimension_numbers = #tpu.dot_dimension_numbers<[1], [0], [0], [1], [0, 0, 1, 1], [], []>} : vector<8x128xf32>, vector<128x128xf32>, vector<8x128xf32> -> vector<8x128xf32>
    %c0_3 = arith.constant 0 : index
    %c0_4 = arith.constant 0 : index
    %3 = vector.load %arg4[%c0_3, %c0_4] : memref<1x128xf32, #tpu.memory_space<vmem>>, vector<1x128xf32>
    %4 = vector.broadcast %3 : vector<1x128xf32> to vector<8x128xf32>
    %5 = arith.addf %2, %4 : vector<8x128xf32>
    %cst_5 = arith.constant 0.000000e+00 : f32
    %6 = vector.broadcast %cst_5 : f32 to vector<8x128xf32>
    %7 = arith.maximumf %5, %6 : vector<8x128xf32>
    %c0_6 = arith.constant 0 : index
    %c0_7 = arith.constant 0 : index
    %8 = vector.load %arg5[%c0_6, %c0_7] : memref<128x128xf32, #tpu.memory_space<vmem>>, vector<128x128xf32>
    %cst_8 = arith.constant dense<0.000000e+00> : vector<8x128xf32>
    %9 = tpu.matmul %7, %8, %cst_8 {dimension_numbers = #tpu.dot_dimension_numbers<[1], [0], [0], [1], [0, 0, 1, 1], [], []>} : vector<8x128xf32>, vector<128x128xf32>, vector<8x128xf32> -> vector<8x128xf32>
    %c0_9 = arith.constant 0 : index
    %c0_10 = arith.constant 0 : index
    %10 = vector.load %arg6[%c0_9, %c0_10] : memref<1x128xf32, #tpu.memory_space<vmem>>, vector<1x128xf32>
    %11 = vector.broadcast %10 : vector<1x128xf32> to vector<8x128xf32>
    %12 = arith.addf %9, %11 : vector<8x128xf32>
    %cst_11 = arith.constant 0.000000e+00 : f32
    %13 = vector.broadcast %cst_11 : f32 to vector<8x128xf32>
    %14 = arith.maximumf %12, %13 : vector<8x128xf32>
    %c0_12 = arith.constant 0 : index
    %c0_13 = arith.constant 0 : index
    %15 = vector.load %arg7[%c0_12, %c0_13] : memref<128x128xf32, #tpu.memory_space<vmem>>, vector<128x128xf32>
    %cst_14 = arith.constant dense<0.000000e+00> : vector<8x128xf32>
    %16 = tpu.matmul %14, %15, %cst_14 {dimension_numbers = #tpu.dot_dimension_numbers<[1], [0], [0], [1], [0, 0, 1, 1], [], []>} : vector<8x128xf32>, vector<128x128xf32>, vector<8x128xf32> -> vector<8x128xf32>
    %c0_15 = arith.constant 0 : index
    %c0_16 = arith.constant 0 : index
    %17 = vector.load %arg8[%c0_15, %c0_16] : memref<1x128xf32, #tpu.memory_space<vmem>>, vector<1x128xf32>
    %18 = vector.broadcast %17 : vector<1x128xf32> to vector<8x128xf32>
    %19 = arith.addf %16, %18 : vector<8x128xf32>
    %c0_17 = arith.constant 0 : index
    %c0_18 = arith.constant 0 : index
    %20 = vector.load %arg9[%c0_17, %c0_18] : memref<128x128xf32, #tpu.memory_space<vmem>>, vector<128x128xf32>
    %cst_19 = arith.constant dense<0.000000e+00> : vector<8x128xf32>
    %21 = tpu.matmul %14, %20, %cst_19 {dimension_numbers = #tpu.dot_dimension_numbers<[1], [0], [0], [1], [0, 0, 1, 1], [], []>} : vector<8x128xf32>, vector<128x128xf32>, vector<8x128xf32> -> vector<8x128xf32>
    %c0_20 = arith.constant 0 : index
    %c0_21 = arith.constant 0 : index
    %22 = vector.load %arg10[%c0_20, %c0_21] : memref<1x128xf32, #tpu.memory_space<vmem>>, vector<1x128xf32>
    %23 = vector.broadcast %22 : vector<1x128xf32> to vector<8x128xf32>
    %24 = arith.addf %21, %23 : vector<8x128xf32>
    %cst_22 = arith.constant 0.000000e+00 : f32
    %25 = vector.broadcast %cst_22 : f32 to vector<8x128xf32>
    %26 = arith.maximumf %24, %25 : vector<8x128xf32>
    %27 = vector.broadcast %cst_22 : f32 to vector<8x128xf32>
    %28 = arith.subf %24, %27 : vector<8x128xf32>
    %29 = arith.cmpf one, %28, %28 : vector<8x128xf32>
    %30 = vector.broadcast %cst_22 : f32 to vector<8x128xf32>
    %31 = arith.addf %24, %30 : vector<8x128xf32>
    %32 = math.absf %28 : vector<8x128xf32>
    %cst_23 = arith.constant 0.000000e+00 : f32
    %33 = vector.broadcast %cst_23 : f32 to vector<8x128xf32>
    %34 = arith.subf %33, %32 : vector<8x128xf32>
    %35 = math.exp %34 : vector<8x128xf32>
    %36 = math.log1p %35 : vector<8x128xf32>
    %37 = arith.addf %26, %36 : vector<8x128xf32>
    %38 = arith.select %29, %31, %37 : vector<8x128xi1>, vector<8x128xf32>
    %cst_24 = arith.constant 9.99999993E-9 : f32
    %39 = vector.broadcast %cst_24 : f32 to vector<8x128xf32>
    %40 = arith.addf %38, %39 : vector<8x128xf32>
    %c0_25 = arith.constant 0 : index
    %c0_26 = arith.constant 0 : index
    %41 = vector.load %arg2[%c0_25, %c0_26] : memref<8x128xf32, #tpu.memory_space<vmem>>, vector<8x128xf32>
    %42 = arith.mulf %40, %41 : vector<8x128xf32>
    %43 = arith.addf %19, %42 : vector<8x128xf32>
    %c0_27 = arith.constant 0 : index
    %c0_28 = arith.constant 0 : index
    %44 = vector.load %arg11[%c0_27, %c0_28] : memref<128x128xf32, #tpu.memory_space<vmem>>, vector<128x128xf32>
    %cst_29 = arith.constant dense<0.000000e+00> : vector<8x128xf32>
    %45 = tpu.matmul %43, %44, %cst_29 {dimension_numbers = #tpu.dot_dimension_numbers<[1], [0], [0], [1], [0, 0, 1, 1], [], []>} : vector<8x128xf32>, vector<128x128xf32>, vector<8x128xf32> -> vector<8x128xf32>
    %c0_30 = arith.constant 0 : index
    %c0_31 = arith.constant 0 : index
    %46 = vector.load %arg12[%c0_30, %c0_31] : memref<1x128xf32, #tpu.memory_space<vmem>>, vector<1x128xf32>
    %47 = vector.broadcast %46 : vector<1x128xf32> to vector<8x128xf32>
    %48 = arith.addf %45, %47 : vector<8x128xf32>
    %cst_32 = arith.constant 0.000000e+00 : f32
    %49 = vector.broadcast %cst_32 : f32 to vector<8x128xf32>
    %50 = arith.maximumf %48, %49 : vector<8x128xf32>
    %c0_33 = arith.constant 0 : index
    %c0_34 = arith.constant 0 : index
    %51 = vector.load %arg13[%c0_33, %c0_34] : memref<128x128xf32, #tpu.memory_space<vmem>>, vector<128x128xf32>
    %cst_35 = arith.constant dense<0.000000e+00> : vector<8x128xf32>
    %52 = tpu.matmul %50, %51, %cst_35 {dimension_numbers = #tpu.dot_dimension_numbers<[1], [0], [0], [1], [0, 0, 1, 1], [], []>} : vector<8x128xf32>, vector<128x128xf32>, vector<8x128xf32> -> vector<8x128xf32>
    %c0_36 = arith.constant 0 : index
    %c0_37 = arith.constant 0 : index
    %53 = vector.load %arg14[%c0_36, %c0_37] : memref<1x128xf32, #tpu.memory_space<vmem>>, vector<1x128xf32>
    %54 = vector.broadcast %53 : vector<1x128xf32> to vector<8x128xf32>
    %55 = arith.addf %52, %54 : vector<8x128xf32>
    %cst_38 = arith.constant 0.000000e+00 : f32
    %56 = vector.broadcast %cst_38 : f32 to vector<8x128xf32>
    %57 = arith.maximumf %55, %56 : vector<8x128xf32>
    %c0_39 = arith.constant 0 : index
    %c0_40 = arith.constant 0 : index
    %58 = vector.load %arg15[%c0_39, %c0_40] : memref<128x128xf32, #tpu.memory_space<vmem>>, vector<128x128xf32>
    %cst_41 = arith.constant dense<0.000000e+00> : vector<8x128xf32>
    %59 = tpu.matmul %57, %58, %cst_41 {dimension_numbers = #tpu.dot_dimension_numbers<[1], [0], [0], [1], [0, 0, 1, 1], [], []>} : vector<8x128xf32>, vector<128x128xf32>, vector<8x128xf32> -> vector<8x128xf32>
    %c0_42 = arith.constant 0 : index
    %c0_43 = arith.constant 0 : index
    %60 = vector.load %arg16[%c0_42, %c0_43] : memref<1x128xf32, #tpu.memory_space<vmem>>, vector<1x128xf32>
    %61 = vector.broadcast %60 : vector<1x128xf32> to vector<8x128xf32>
    %62 = arith.addf %59, %61 : vector<8x128xf32>
    %c0_44 = arith.constant 0 : index
    %c0_45 = arith.constant 0 : index
    %63 = vector.load %arg17[%c0_44, %c0_45] : memref<8x128xf32, #tpu.memory_space<vmem>>, vector<8x128xf32>
    tpu.vector_store %arg17[%c0_44, %c0_45], %62 {strides = array<i32>} : memref<8x128xf32, #tpu.memory_space<vmem>>, vector<8x128xf32>,
    %c0_46 = arith.constant 0 : index
    %c0_47 = arith.constant 0 : index
    %64 = vector.load %arg18[%c0_46, %c0_47] : memref<8x384xf32, #tpu.memory_space<vmem>>, vector<8x128xf32>
    tpu.vector_store %arg18[%c0_46, %c0_47], %43 {strides = array<i32>} : memref<8x384xf32, #tpu.memory_space<vmem>>, vector<8x128xf32>,
    %c0_48 = arith.constant 0 : index
    %c128 = arith.constant 128 : index
    %65 = vector.load %arg18[%c0_48, %c128] : memref<8x384xf32, #tpu.memory_space<vmem>>, vector<8x128xf32>
    tpu.vector_store %arg18[%c0_48, %c128], %19 {strides = array<i32>} : memref<8x384xf32, #tpu.memory_space<vmem>>, vector<8x128xf32>,
    %c0_49 = arith.constant 0 : index
    %c256 = arith.constant 256 : index
    %66 = vector.load %arg18[%c0_49, %c256] : memref<8x384xf32, #tpu.memory_space<vmem>>, vector<8x128xf32>
    tpu.vector_store %arg18[%c0_49, %c256], %40 {strides = array<i32>} : memref<8x384xf32, #tpu.memory_space<vmem>>, vector<8x128xf32>,
    return
  }
  func.func @transform_0(%arg0: i32) -> (i32, i32) {
    %c0_i32 = arith.constant 0 : i32
    %c0_i32_0 = arith.constant 0 : i32
    return %arg0, %c0_i32 : i32, i32
  }
  func.func @transform_1(%arg0: i32) -> (i32, i32) {
    %c0_i32 = arith.constant 0 : i32
    %c0_i32_0 = arith.constant 0 : i32
    return %arg0, %c0_i32 : i32, i32
  }
  func.func @transform_2(%arg0: i32) -> (i32, i32) {
    %c0_i32 = arith.constant 0 : i32
    %c0_i32_0 = arith.constant 0 : i32
    %c0_i32_1 = arith.constant 0 : i32
    return %c0_i32, %c0_i32_0 : i32, i32
  }
  func.func @transform_3(%arg0: i32) -> (i32, i32) {
    %c0_i32 = arith.constant 0 : i32
    %c0_i32_0 = arith.constant 0 : i32
    %c0_i32_1 = arith.constant 0 : i32
    return %c0_i32, %c0_i32_0 : i32, i32
  }
  func.func @transform_4(%arg0: i32) -> (i32, i32) {
    %c0_i32 = arith.constant 0 : i32
    %c0_i32_0 = arith.constant 0 : i32
    %c0_i32_1 = arith.constant 0 : i32
    return %c0_i32, %c0_i32_0 : i32, i32
  }
  func.func @transform_5(%arg0: i32) -> (i32, i32) {
    %c0_i32 = arith.constant 0 : i32
    %c0_i32_0 = arith.constant 0 : i32
    %c0_i32_1 = arith.constant 0 : i32
    return %c0_i32, %c0_i32_0 : i32, i32
  }
  func.func @transform_6(%arg0: i32) -> (i32, i32) {
    %c0_i32 = arith.constant 0 : i32
    %c0_i32_0 = arith.constant 0 : i32
    %c0_i32_1 = arith.constant 0 : i32
    return %c0_i32, %c0_i32_0 : i32, i32
  }
  func.func @transform_7(%arg0: i32) -> (i32, i32) {
    %c0_i32 = arith.constant 0 : i32
    %c0_i32_0 = arith.constant 0 : i32
    %c0_i32_1 = arith.constant 0 : i32
    return %c0_i32, %c0_i32_0 : i32, i32
  }
  func.func @transform_8(%arg0: i32) -> (i32, i32) {
    %c0_i32 = arith.constant 0 : i32
    %c0_i32_0 = arith.constant 0 : i32
    %c0_i32_1 = arith.constant 0 : i32
    return %c0_i32, %c0_i32_0 : i32, i32
  }
  func.func @transform_9(%arg0: i32) -> (i32, i32) {
    %c0_i32 = arith.constant 0 : i32
    %c0_i32_0 = arith.constant 0 : i32
    %c0_i32_1 = arith.constant 0 : i32
    return %c0_i32, %c0_i32_0 : i32, i32
  }
  func.func @transform_10(%arg0: i32) -> (i32, i32) {
    %c0_i32 = arith.constant 0 : i32
    %c0_i32_0 = arith.constant 0 : i32
    %c0_i32_1 = arith.constant 0 : i32
    return %c0_i32, %c0_i32_0 : i32, i32
  }
  func.func @transform_11(%arg0: i32) -> (i32, i32) {
    %c0_i32 = arith.constant 0 : i32
    %c0_i32_0 = arith.constant 0 : i32
    %c0_i32_1 = arith.constant 0 : i32
    return %c0_i32, %c0_i32_0 : i32, i32
  }
  func.func @transform_12(%arg0: i32) -> (i32, i32) {
    %c0_i32 = arith.constant 0 : i32
    %c0_i32_0 = arith.constant 0 : i32
    %c0_i32_1 = arith.constant 0 : i32
    return %c0_i32, %c0_i32_0 : i32, i32
  }
  func.func @transform_13(%arg0: i32) -> (i32, i32) {
    %c0_i32 = arith.constant 0 : i32
    %c0_i32_0 = arith.constant 0 : i32
    %c0_i32_1 = arith.constant 0 : i32
    return %c0_i32, %c0_i32_0 : i32, i32
  }
  func.func @transform_14(%arg0: i32) -> (i32, i32) {
    %c0_i32 = arith.constant 0 : i32
    %c0_i32_0 = arith.constant 0 : i32
    %c0_i32_1 = arith.constant 0 : i32
    return %c0_i32, %c0_i32_0 : i32, i32
  }
  func.func @transform_15(%arg0: i32) -> (i32, i32) {
    %c0_i32 = arith.constant 0 : i32
    %c0_i32_0 = arith.constant 0 : i32
    %c0_i32_1 = arith.constant 0 : i32
    return %c0_i32, %c0_i32_0 : i32, i32
  }
  func.func @transform_16(%arg0: i32) -> (i32, i32) {
    %c0_i32 = arith.constant 0 : i32
    %c0_i32_0 = arith.constant 0 : i32
    return %arg0, %c0_i32 : i32, i32
  }
  func.func @transform_17(%arg0: i32) -> (i32, i32) {
    %c0_i32 = arith.constant 0 : i32
    %c0_i32_0 = arith.constant 0 : i32
    return %arg0, %c0_i32 : i32, i32
  }
}

</mosaic_0001>

<bundles_post_ra>
// kernel: vae_forward.1
= control target key start
LH: loop header
LB: loop body
LE: loop exit
PB: predicated region body
PF: predicated region fallthrough
CT: control target
= control target key end

     0   :  { %s1944_s0 = inlined_call_operand.vmem [shape: f32[8,128], index: 0, kind: input, shape index: {}]   ;;  %s1945_s1 = inlined_call_operand.vmem [shape: f32[8,128], index: 1, kind: input, shape index: {}]   ;;  %s1946_s2 = inlined_call_operand.hbm [shape: f32[128,128], index: 2, kind: input, shape index: {}]   ;;  %s1947_s3 = inlined_call_operand.vmem [shape: f32[1,128], index: 3, kind: input, shape index: {}]   ;;  %s1948_s4 = inlined_call_operand.hbm [shape: f32[128,128], index: 4, kind: input, shape index: {}]   ;;  %s1949_s5 = inlined_call_operand.vmem [shape: f32[1,128], index: 5, kind: input, shape index: {}]   ;;  %s1950_s6 = inlined_call_operand.hbm [shape: f32[128,128], index: 6, kind: input, shape index: {}]   ;;  %s1951_s7 = inlined_call_operand.vmem [shape: f32[1,128], index: 7, kind: input, shape index: {}]   ;;  %s1952_s8 = inlined_call_operand.hbm [shape: f32[128,128], index: 8, kind: input, shape index: {}]   ;;  %s1953_s9 = inlined_call_operand.vmem [shape: f32[1,128], index: 9, kind: input, shape index: {}]   ;;  %s1954_s10 = inlined_call_operand.hbm [shape: f32[128,128], index: 10, kind: input, shape index: {}]   ;;  %s1955_s11 = inlined_call_operand.vmem [shape: f32[1,128], index: 11, kind: input, shape index: {}]   ;;  %s1956_s12 = inlined_call_operand.hbm [shape: f32[128,128], index: 12, kind: input, shape index: {}]   ;;  %s1957_s13 = inlined_call_operand.vmem [shape: f32[1,128], index: 13, kind: input, shape index: {}]   ;;  %s1958_s14 = inlined_call_operand.hbm [shape: f32[128,128], index: 14, kind: input, shape index: {}]   ;;  %s1959_s15 = inlined_call_operand.vmem [shape: f32[1,128], index: 15, kind: input, shape index: {}]   ;;  %s1960_s16 = inlined_call_operand.hbm [shape: f32[8,128], index: 16, kind: output, shape index: {0}]   ;;  %s1961_s17 = inlined_call_operand.vmem [shape: f32[8,384], index: 17, kind: output, shape index: {1}]  }
   0x1   :  { %1962 = sst [smem:[#allocation20_spill]] %s1944_s0 }
   0x2   :  { %1963 = sst [smem:[#allocation21_spill]] %s1945_s1 }
   0x3   :  { %23 = vsyncpa [#allocation3], 0 }
   0x4   :  { %24 = vsyncpa [#allocation6], 0 }
   0x5   :  { %25 = vsyncpa [#allocation9], 0 }
   0x6   :  { %26 = vsyncpa [#allocation12], 0 }
   0x7   :  { %27 = vsyncpa [#allocation4], 0  ;;  %s1597_s24 = smov [#allocation5]   ;;  %s1598_s26 = smov [#allocation8]  }
   0x8   :  { %s51_s25 = sshll.u32 %s1597_s24, 4  ;;  %s79_s27 = sshll.u32 %s1598_s26, 4  ;;  %s52_s25 = int_to_ptr.vmem [resolvable:$true] %s51_s25  ;;  %s1700_s27 = int_to_ptr.vmem [resolvable:$true] %s79_s27 }
   0x9   :  { %s1411_s0 = scalar_lea.hbm %s1948_s4, 2048 }
   0xa   :  { %p1412_p0 = scmp.ne.s32.totalorder %s1948_s4, %s1411_s0  ;;  %p1415_p1 = scmp.lt.u32.totalorder %s1411_s0, %s1948_s4 }
   0xc   :  { %p1417_p2 = pnand %p1415_p1, %p1412_p0 }
   0xe   :  { %1420 = shalt.err (!%p1417_p2)
}
   0xf   :  { %s1421_s20 = scalar_lea.vmem %s52_s25, 2048  ;;  %p1426_p4 = scmp.lt.s32.totalorder %s52_s25, %s52_s25 }
  0x10   :  { %p1422_p3 = scmp.ne.s32.totalorder %s52_s25, %s1421_s20  ;;  %p1427_p5 = scmp.lt.s32.totalorder %s1421_s20, %s1421_s20 }
  0x12   :  { %p1428_p6 = por %p1427_p5, %p1426_p4 }
  0x14   :  { %p1429_p7 = pnand %p1428_p6, %p1422_p3 }
  0x16   :  { %1432 = shalt.err (!%p1429_p7)
}
  0x17   :  { %s1599_s21 = smov 128   ;;  %s1600_s22 = smov 8  }
  0x18   :  { %57 = dma.hbm_to_vmem [thread:$0]  %s1948_s4, 2048, %s52_s25, [#allocation6], %s1599_s21, %s1599_s21, %s1600_s22  }
  0x19   :  { %s1433_s29 = scalar_lea.hbm %s1952_s8, 2048 }
  0x1a   :  { %p1434_p8 = scmp.ne.s32.totalorder %s1952_s8, %s1433_s29  ;;  %p1437_p9 = scmp.lt.u32.totalorder %s1433_s29, %s1952_s8 }
  0x1c   :  { %p1439_p10 = pnand %p1437_p9, %p1434_p8 }
  0x1e   :  { %1442 = shalt.err (!%p1439_p10)
}
  0x1f   :  { %s1443_s1 = scalar_lea.vmem %s1700_s27, 2048  ;;  %p1448_p12 = scmp.lt.s32.totalorder %s1700_s27, %s1700_s27 }
  0x20   :  { %p1444_p11 = scmp.ne.s32.totalorder %s1700_s27, %s1443_s1  ;;  %p1449_p13 = scmp.lt.s32.totalorder %s1443_s1, %s1443_s1 }
  0x22   :  { %p1450_p0 = por %p1449_p13, %p1448_p12 }
  0x24   :  { %p1451_p1 = pnand %p1450_p0, %p1444_p11 }
  0x26   :  { %1454 = shalt.err (!%p1451_p1)
}
  0x27   :  { %85 = dma.hbm_to_vmem [thread:$0]  %s1952_s8, 2048, %s1700_s27, [#allocation9], %s1599_s21, %s1599_s21, %s1600_s22  }
  0x28   :  { %s1601_s20 = smov [#allocation11]   ;;  %s1602_s24 = smov [#allocation2]  }
  0x29   :  { %s107_s23 = sshll.u32 %s1601_s20, 4  ;;  %s37_s26 = sshll.u32 %s1602_s24, 4  ;;  %s108_s23 = int_to_ptr.vmem [resolvable:$true] %s107_s23  ;;  %s1737_s26 = int_to_ptr.vmem [resolvable:$true] %s37_s26 }
  0x2a   :  { %s1455_s0 = scalar_lea.hbm %s1956_s12, 2048 }
  0x2b   :  { %p1456_p2 = scmp.ne.s32.totalorder %s1956_s12, %s1455_s0  ;;  %p1459_p3 = scmp.lt.u32.totalorder %s1455_s0, %s1956_s12 }
  0x2d   :  { %p1461_p4 = pnand %p1459_p3, %p1456_p2 }
  0x2f   :  { %1464 = shalt.err (!%p1461_p4)
}
  0x30   :  { %s1465_s8 = scalar_lea.vmem %s108_s23, 2048  ;;  %p1470_p6 = scmp.lt.s32.totalorder %s108_s23, %s108_s23 }
  0x31   :  { %p1466_p5 = scmp.ne.s32.totalorder %s108_s23, %s1465_s8  ;;  %p1471_p7 = scmp.lt.s32.totalorder %s1465_s8, %s1465_s8 }
  0x33   :  { %p1472_p8 = por %p1471_p7, %p1470_p6 }
  0x35   :  { %p1473_p9 = pnand %p1472_p8, %p1466_p5 }
  0x37   :  { %1476 = shalt.err (!%p1473_p9)
}
  0x38   :  { %113 = dma.hbm_to_vmem [thread:$0]  %s1956_s12, 2048, %s108_s23, [#allocation12], %s1599_s21, %s1599_s21, %s1600_s22  }
  0x39   :  { %s1477_s24 = scalar_lea.hbm %s1946_s2, 2048 }
  0x3a   :  { %p1478_p10 = scmp.ne.s32.totalorder %s1946_s2, %s1477_s24  ;;  %p1481_p11 = scmp.lt.u32.totalorder %s1477_s24, %s1946_s2 }
  0x3c   :  { %p1483_p12 = pnand %p1481_p11, %p1478_p10 }
  0x3e   :  { %1486 = shalt.err (!%p1483_p12)
}
  0x3f   :  { %s1487_s18 = scalar_lea.vmem %s1737_s26, 2048  ;;  %p1492_p0 = scmp.lt.s32.totalorder %s1737_s26, %s1737_s26 }
  0x40   :  { %p1488_p13 = scmp.ne.s32.totalorder %s1737_s26, %s1487_s18  ;;  %p1493_p1 = scmp.lt.s32.totalorder %s1487_s18, %s1487_s18 }
  0x42   :  { %p1494_p2 = por %p1493_p1, %p1492_p0 }
  0x44   :  { %p1495_p3 = pnand %p1494_p2, %p1488_p13 }
  0x46   :  { %1498 = shalt.err (!%p1495_p3)
}
  0x47   :  { %43 = dma.hbm_to_vmem [thread:$0]  %s1946_s2, 2048, %s1737_s26, [#allocation3], %s1599_s21, %s1599_s21, %s1600_s22  }
  0x48   :  { %s1603_s19 = smov [#allocation7]   ;;  %s1604_s8 = smov [#allocation10]  }
  0x49   :  { %s65_s1 = sshll.u32 %s1603_s19, 4  ;;  %s93_s27 = sshll.u32 %s1604_s8, 4  ;;  %s66_s1 = int_to_ptr.vmem [resolvable:$true] %s65_s1  ;;  %s1774_s27 = int_to_ptr.vmem [resolvable:$true] %s93_s27 }
  0x4a   :  { %s1499_s20 = scalar_lea.hbm %s1950_s6, 2048 }
  0x4b   :  { %p1500_p4 = scmp.ne.s32.totalorder %s1950_s6, %s1499_s20  ;;  %p1503_p5 = scmp.lt.u32.totalorder %s1499_s20, %s1950_s6 }
  0x4d   :  { %p1505_p6 = pnand %p1503_p5, %p1500_p4 }
  0x4f   :  { %1508 = shalt.err (!%p1505_p6)
}
  0x50   :  { %s1509_s2 = scalar_lea.vmem %s66_s1, 2048  ;;  %p1514_p8 = scmp.lt.s32.totalorder %s66_s1, %s66_s1 }
  0x51   :  { %p1510_p7 = scmp.ne.s32.totalorder %s66_s1, %s1509_s2  ;;  %p1515_p9 = scmp.lt.s32.totalorder %s1509_s2, %s1509_s2 }
  0x53   :  { %p1516_p10 = por %p1515_p9, %p1514_p8 }
  0x55   :  { %p1517_p11 = pnand %p1516_p10, %p1510_p7 }
  0x57   :  { %1520 = shalt.err (!%p1517_p11)
}
  0x58   :  { %71 = dma.hbm_to_vmem [thread:$0]  %s1950_s6, 2048, %s66_s1, [#allocation6], %s1599_s21, %s1599_s21, %s1600_s22  }
  0x59   :  { %s1521_s23 = scalar_lea.hbm %s1954_s10, 2048 }
  0x5a   :  { %p1522_p12 = scmp.ne.s32.totalorder %s1954_s10, %s1521_s23  ;;  %p1525_p13 = scmp.lt.u32.totalorder %s1521_s23, %s1954_s10 }
  0x5c   :  { %p1527_p0 = pnand %p1525_p13, %p1522_p12 }
  0x5e   :  { %1530 = shalt.err (!%p1527_p0)
}
  0x5f   :  { %s1531_s20 = scalar_lea.vmem %s1774_s27, 2048  ;;  %p1536_p2 = scmp.lt.s32.totalorder %s1774_s27, %s1774_s27 }
  0x60   :  { %p1532_p1 = scmp.ne.s32.totalorder %s1774_s27, %s1531_s20  ;;  %p1537_p3 = scmp.lt.s32.totalorder %s1531_s20, %s1531_s20 }
  0x62   :  { %p1538_p4 = por %p1537_p3, %p1536_p2 }
  0x64   :  { %p1539_p5 = pnand %p1538_p4, %p1532_p1 }
  0x66   :  { %1542 = shalt.err (!%p1539_p5)
}
  0x67   :  { %99 = dma.hbm_to_vmem [thread:$0]  %s1954_s10, 2048, %s1774_s27, [#allocation9], %s1599_s21, %s1599_s21, %s1600_s22  }
  0x68   :  { %s1605_s24 = smov [#allocation13]   ;;  %s1543_s2 = scalar_lea.hbm %s1958_s14, 2048 }
  0x69   :  { %s121_s28 = sshll.u32 %s1605_s24, 4  ;;  %p1544_p6 = scmp.ne.s32.totalorder %s1958_s14, %s1543_s2  ;;  %s122_s28 = int_to_ptr.vmem [resolvable:$true] %s121_s28 }
  0x6a   :  { %p1547_p7 = scmp.lt.u32.totalorder %s1543_s2, %s1958_s14 }
  0x6c   :  { %p1549_p8 = pnand %p1547_p7, %p1544_p6 }
  0x6e   :  { %1552 = shalt.err (!%p1549_p8)
}
  0x6f   :  { %s1553_s23 = scalar_lea.vmem %s122_s28, 2048  ;;  %p1558_p10 = scmp.lt.s32.totalorder %s122_s28, %s122_s28 }
  0x70   :  { %p1554_p9 = scmp.ne.s32.totalorder %s122_s28, %s1553_s23  ;;  %p1559_p11 = scmp.lt.s32.totalorder %s1553_s23, %s1553_s23 }
  0x72   :  { %p1560_p12 = por %p1559_p11, %p1558_p10 }
  0x74   :  { %p1561_p13 = pnand %p1560_p12, %p1554_p9 }
  0x76   :  { %1564 = shalt.err (!%p1561_p13)
}
  0x77   :  { %127 = dma.hbm_to_vmem [thread:$0]  %s1958_s14, 2048, %s122_s28, [#allocation12], %s1599_s21, %s1599_s21, %s1600_s22  }
  0x78   :  { %1587 = dma.done.wait [#allocation3], 2048  }
  0x79   :  { %1588 = vsyncadd [#allocation3], 4294965248 }
  0x7a   :  { %1589 = dma.done.wait [#allocation6], 4096  }
  0x7b   :  { %1590 = vsyncadd [#allocation6], 4294963200 }
  0x7c   :  { %1591 = dma.done.wait [#allocation9], 4096  }
  0x7d   :  { %1592 = vsyncadd [#allocation9], 4294963200 }
  0x7e   :  { %1593 = dma.done.wait [#allocation12], 4096  }
  0x7f   :  { %1594 = vsyncadd [#allocation12], 4294963200  ;;  %v1606_v0 = vmov 0.0|0.0   ;;  %vm1607_vm0 = vmmov 0   ;;  %v1608_v1 = vmov 0.0   ;;  %v152_v2 = vld [vmem:[#allocation2] sm:$0xff] }
  0x80   :  { %1226 = vmatprep.subr.bf16.mxu0 %v1606_v0  ;;  %1013 = vmatprep.mubr.msk.f32.mxu0 %vm1607_vm0, %v1608_v1  ;;  %v153_v3 = vld [vmem:[#allocation2 + $0x8] sm:$0xff]  ;;  %v154_v4 = vld [vmem:[#allocation2 + $0x10] sm:$0xff]  ;;  %v155_v6 = vld [vmem:[#allocation2 + $0x18] sm:$0xff]  ;;  %s1964_s22 = sld [smem:[#allocation20_spill]]  ;;  %s1965_s28 = sld [smem:[#allocation21_spill]] }
  0x81   :  { %1250 = vmatprep.subr.bf16.mxu1 %v1606_v0  ;;  %1048 = vmatprep.mubr.msk.f32.mxu1 %vm1607_vm0, %v1608_v1  ;;  %v1227_v5 = vpack.c.bf16 %v153_v3, %v152_v2  ;;  %v1230_v7 = vpack.c.bf16 %v155_v6, %v154_v4  ;;  %v156_v8 = vld [vmem:[#allocation2 + $0x20] sm:$0xff]  ;;  %v157_v9 = vld [vmem:[#allocation2 + $0x28] sm:$0xff]  ;;  %v248_v12 = vld [vmem:[#allocation5 + $0x10] sm:$0xff]  ;;  %s1609_s10 = smov [#allocation14]  }
  0x82   :  { %v246_v10 = vld [vmem:[#allocation5] sm:$0xff]  ;;  %v247_v11 = vld [vmem:[#allocation5 + $0x8] sm:$0xff]  ;;  %v249_v13 = vld [vmem:[#allocation5 + $0x18] sm:$0xff]  ;;  %v1233_v14 = vpack.c.bf16 %v157_v9, %v156_v8  ;;  %s839_s27 = sshll.u32 %s1609_s10, 4  ;;  %s840_s27 = int_to_ptr.vmem [resolvable:$true] %s839_s27 }
  0x83   :  { %1228 = vmatpush3.bf16.msra.mxu0 %v1227_v5  ;;  %v1251_v15 = vpack.c.bf16 %v247_v11, %v246_v10  ;;  %v158_v16 = vld [vmem:[#allocation2 + $0x30] sm:$0xff]  ;;  %v159_v17 = vld [vmem:[#allocation2 + $0x38] sm:$0xff]  ;;  %v1254_v18 = vpack.c.bf16 %v249_v13, %v248_v12  ;;  %v250_v19 = vld [vmem:[#allocation5 + $0x20] sm:$0xff]  ;;  %s1565_s14 = scalar_lea.vmem %s840_s27, 128  ;;  %p1570_p1 = scmp.lt.s32.totalorder %s840_s27, %s840_s27 }
  0x84   :  { %1229 = vmatprep.subr.bf16.mxu0 %v1606_v0  ;;  %v251_v20 = vld [vmem:[#allocation5 + $0x28] sm:$0xff]  ;;  %v1236_v21 = vpack.c.bf16 %v159_v17, %v158_v16  ;;  %v160_v22 = vld [vmem:[#allocation2 + $0x40] sm:$0xff]  ;;  %v252_v25 = vld [vmem:[#allocation5 + $0x30] sm:$0xff]  ;;  %p1566_p0 = scmp.ne.s32.totalorder %s840_s27, %s1565_s14  ;;  %p1571_p2 = scmp.lt.s32.totalorder %s1565_s14, %s1565_s14 }
  0x85   :  { %1252 = vmatpush3.bf16.msra.mxu1 %v1251_v15  ;;  %v161_v23 = vld [vmem:[#allocation2 + $0x48] sm:$0xff]  ;;  %v1257_v24 = vpack.c.bf16 %v251_v20, %v250_v19  ;;  %v253_v26 = vld [vmem:[#allocation5 + $0x38] sm:$0xff]  ;;  %v162_v28 = vld [vmem:[#allocation2 + $0x50] sm:$0xff] }
  0x86   :  { %1253 = vmatprep.subr.bf16.mxu1 %v1606_v0  ;;  %v1239_v27 = vpack.c.bf16 %v161_v23, %v160_v22  ;;  %v163_v29 = vld [vmem:[#allocation2 + $0x58] sm:$0xff]  ;;  %v1260_v30 = vpack.c.bf16 %v253_v26, %v252_v25  ;;  %v254_v31 = vld [vmem:[#allocation5 + $0x40] sm:$0xff]  ;;  %v255_v32 = vld [vmem:[#allocation5 + $0x48] sm:$0xff]  ;;  %p1572_p3 = por %p1571_p2, %p1570_p1 }
  0x87   :  { %1231 = vmatpush3.bf16.msra.mxu0 %v1230_v7  ;;  %v1242_v33 = vpack.c.bf16 %v163_v29, %v162_v28  ;;  %v164_v34 = vld [vmem:[#allocation2 + $0x60] sm:$0xff]  ;;  %v165_v35 = vld [vmem:[#allocation2 + $0x68] sm:$0xff]  ;;  %v1263_v36 = vpack.c.bf16 %v255_v32, %v254_v31  ;;  %v256_v37 = vld [vmem:[#allocation5 + $0x50] sm:$0xff] }
  0x88   :  { %1232 = vmatprep.subr.bf16.mxu0 %v1606_v0  ;;  %v257_v38 = vld [vmem:[#allocation5 + $0x58] sm:$0xff]  ;;  %v1245_v39 = vpack.c.bf16 %v165_v35, %v164_v34  ;;  %v166_v40 = vld [vmem:[#allocation2 + $0x70] sm:$0xff]  ;;  %v258_v43 = vld [vmem:[#allocation5 + $0x60] sm:$0xff]  ;;  %p1573_p4 = pnand %p1572_p3, %p1566_p0 }
  0x89   :  { %1255 = vmatpush3.bf16.msra.mxu1 %v1254_v18  ;;  %v167_v41 = vld [vmem:[#allocation2 + $0x78] sm:$0xff]  ;;  %v1266_v42 = vpack.c.bf16 %v257_v38, %v256_v37  ;;  %v259_v44 = vld [vmem:[#allocation5 + $0x68] sm:$0xff]  ;;  %v151_v47 = vld [vmem:[%s1964_s22] sm:$0xff] }
  0x8a   :  { %1256 = vmatprep.subr.bf16.mxu1 %v1606_v0  ;;  %v1248_v45 = vpack.c.bf16 %v167_v41, %v166_v40  ;;  %v1269_v46 = vpack.c.bf16 %v259_v44, %v258_v43  ;;  %v260_v48 = vld [vmem:[#allocation5 + $0x70] sm:$0xff]  ;;  %v261_v49 = vld [vmem:[#allocation5 + $0x78] sm:$0xff]  ;;  %v340_v51 = vld [vmem:[#allocation7] sm:$0xff] }
  0x8b   :  { %1234 = vmatpush3.bf16.msra.mxu0 %v1233_v14  ;;  %v1272_v50 = vpack.c.bf16 %v261_v49, %v260_v48  ;;  %v341_v52 = vld [vmem:[#allocation7 + $0x8] sm:$0xff]  ;;  %v342_v54 = vld [vmem:[#allocation7 + $0x10] sm:$0xff]  ;;  %v343_v55 = vld [vmem:[#allocation7 + $0x18] sm:$0xff] }
  0x8c   :  { %1235 = vmatprep.subr.bf16.mxu0 %v1606_v0  ;;  %v1275_v53 = vpack.c.bf16 %v341_v52, %v340_v51  ;;  %v1278_v56 = vpack.c.bf16 %v343_v55, %v342_v54  ;;  %v344_v57 = vld [vmem:[#allocation7 + $0x20] sm:$0xff]  ;;  %v345_v58 = vld [vmem:[#allocation7 + $0x28] sm:$0xff]  ;;  %v346_v60 = vld [vmem:[#allocation7 + $0x30] sm:$0xff] }
  0x8d   :  { %1258 = vmatpush3.bf16.msra.mxu1 %v1257_v24  ;;  %v1281_v59 = vpack.c.bf16 %v345_v58, %v344_v57  ;;  %v347_v61 = vld [vmem:[#allocation7 + $0x38] sm:$0xff]  ;;  %v348_v63 = vld [vmem:[#allocation7 + $0x40] sm:$0xff]  ;;  %v349_v2 = vld [vmem:[#allocation7 + $0x48] sm:$0xff] }
  0x8e   :  { %1259 = vmatprep.subr.bf16.mxu1 %v1606_v0  ;;  %v1284_v62 = vpack.c.bf16 %v347_v61, %v346_v60  ;;  %v1287_v3 = vpack.c.bf16 %v349_v2, %v348_v63  ;;  %v350_v4 = vld [vmem:[#allocation7 + $0x50] sm:$0xff]  ;;  %v351_v5 = vld [vmem:[#allocation7 + $0x58] sm:$0xff]  ;;  %v352_v7 = vld [vmem:[#allocation7 + $0x60] sm:$0xff] }
  0x8f   :  { %1237 = vmatpush3.bf16.msra.mxu0 %v1236_v21  ;;  %v1290_v6 = vpack.c.bf16 %v351_v5, %v350_v4  ;;  %v353_v8 = vld [vmem:[#allocation7 + $0x68] sm:$0xff]  ;;  %v855_v10 = vld [vmem:[%s1947_s3] ss:$0 sm:$0xff]  ;;  %v435_v18 = vld [vmem:[#allocation8 + $0x10] sm:$0xff] }
  0x90   :  { %1238 = vmatprep.subr.bf16.mxu0 %v1606_v0  ;;  %v1293_v9 = vpack.c.bf16 %v353_v8, %v352_v7  ;;  %v433_v11 = vld [vmem:[#allocation8] sm:$0xff]  ;;  %v434_v12 = vld [vmem:[#allocation8 + $0x8] sm:$0xff]  ;;  %v436_v19 = vld [vmem:[#allocation8 + $0x18] sm:$0xff] }
  0x91   :  { %1261 = vmatpush3.bf16.msra.mxu1 %v1260_v30  ;;  %v1299_v16 = vpack.c.bf16 %v434_v12, %v433_v11  ;;  %v1302_v20 = vpack.c.bf16 %v436_v19, %v435_v18  ;;  %v437_v21 = vld [vmem:[#allocation8 + $0x20] sm:$0xff]  ;;  %v438_v22 = vld [vmem:[#allocation8 + $0x28] sm:$0xff]  ;;  %v439_v24 = vld [vmem:[#allocation8 + $0x30] sm:$0xff] }
  0x92   :  { %1262 = vmatprep.subr.bf16.mxu1 %v1606_v0  ;;  %v1305_v23 = vpack.c.bf16 %v438_v22, %v437_v21  ;;  %v440_v25 = vld [vmem:[#allocation8 + $0x38] sm:$0xff]  ;;  %v442_v28 = vld [vmem:[#allocation8 + $0x48] sm:$0xff]  ;;  %v443_v30 = vld [vmem:[#allocation8 + $0x50] sm:$0xff] }
  0x93   :  { %1240 = vmatpush3.bf16.msra.mxu0 %v1239_v27  ;;  %v1308_v26 = vpack.c.bf16 %v440_v25, %v439_v24  ;;  %v441_v27 = vld [vmem:[#allocation8 + $0x40] sm:$0xff]  ;;  %v444_v31 = vld [vmem:[#allocation8 + $0x58] sm:$0xff]  ;;  %v446_v34 = vld [vmem:[#allocation8 + $0x68] sm:$0xff] }
  0x94   :  { %1241 = vmatprep.subr.bf16.mxu0 %v1606_v0  ;;  %v1311_v29 = vpack.c.bf16 %v442_v28, %v441_v27  ;;  %v1314_v32 = vpack.c.bf16 %v444_v31, %v443_v30  ;;  %v355_v37 = vld [vmem:[#allocation7 + $0x78] sm:$0xff]  ;;  %v447_v38 = vld [vmem:[#allocation8 + $0x70] sm:$0xff]  ;;  %v549_v48 = vld [vmem:[#allocation10 + $0x8] sm:$0xff] }
  0x95   :  { %1264 = vmatpush3.bf16.msra.mxu1 %v1263_v36  ;;  %v354_v36 = vld [vmem:[#allocation7 + $0x70] sm:$0xff]  ;;  %v448_v40 = vld [vmem:[#allocation8 + $0x78] sm:$0xff]  ;;  %v553_v54 = vld [vmem:[#allocation10 + $0x28] sm:$0xff] }
  0x96   :  { %1265 = vmatprep.subr.bf16.mxu1 %v1606_v0  ;;  %v1320_v41 = vpack.c.bf16 %v448_v40, %v447_v38  ;;  %v551_v51 = vld [vmem:[#allocation10 + $0x18] sm:$0xff]  ;;  %v557_v60 = vld [vmem:[#allocation10 + $0x48] sm:$0xff]  ;;  %v644_v11 = vld [vmem:[#allocation11 + $0x10] sm:$0xff] }
  0x97   :  { %1243 = vmatpush3.bf16.msra.mxu0 %v1242_v33  ;;  %v445_v33 = vld [vmem:[#allocation8 + $0x60] sm:$0xff]  ;;  %v555_v57 = vld [vmem:[#allocation10 + $0x38] sm:$0xff]  ;;  %v561_v4 = vld [vmem:[#allocation10 + $0x68] sm:$0xff] }
  0x98   :  { %1244 = vmatprep.subr.bf16.mxu0 %v1606_v0  ;;  %v1317_v35 = vpack.c.bf16 %v446_v34, %v445_v33  ;;  %v559_v63 = vld [vmem:[#allocation10 + $0x58] sm:$0xff]  ;;  %v648_v18 = vld [vmem:[#allocation11 + $0x30] sm:$0xff]  ;;  %v650_v21 = vld [vmem:[#allocation11 + $0x40] sm:$0xff] }
  0x99   :  { %1267 = vmatpush3.bf16.msra.mxu1 %v1266_v42  ;;  %v856_v42 = vld [vmem:[%s1949_s5] ss:$0 sm:$0xff]  ;;  %v563_v7 = vld [vmem:[#allocation10 + $0x78] sm:$0xff]  ;;  %v651_v22 = vld [vmem:[#allocation11 + $0x48] sm:$0xff] }
  0x9a   :  { %1268 = vmatprep.subr.bf16.mxu1 %v1606_v0  ;;  %v649_v19 = vld [vmem:[#allocation11 + $0x38] sm:$0xff]  ;;  %v652_v24 = vld [vmem:[#allocation11 + $0x50] sm:$0xff]  ;;  %v654_v27 = vld [vmem:[#allocation11 + $0x60] sm:$0xff] }
  0x9b   :  { %1246 = vmatpush3.bf16.msra.mxu0 %v1245_v39  ;;  %v1296_v39 = vpack.c.bf16 %v355_v37, %v354_v36  ;;  %v653_v25 = vld [vmem:[#allocation11 + $0x58] sm:$0xff]  ;;  %v655_v28 = vld [vmem:[#allocation11 + $0x68] sm:$0xff]  ;;  %v857_v30 = vld [vmem:[%s1951_s7] ss:$0 sm:$0xff] }
  0x9c   :  { %1247 = vmatprep.subr.bf16.mxu0 %v1606_v0  ;;  %v858_v31 = vld [vmem:[%s1953_s9] ss:$0 sm:$0xff] }
  0x9d   :  { %1270 = vmatpush3.bf16.msra.mxu1 %v1269_v46 }
  0x9e   :  { %1271 = vmatprep.subr.bf16.mxu1 %v1606_v0 }
  0x9f   :  { %1249 = vmatpush3.bf16.msra.mxu0 %v1248_v45 }
  0xa0   :  { %1274 = vmatprep.subr.bf16.mxu0 %v1606_v0 }
  0xa1   :  { %1273 = vmatpush3.bf16.msra.mxu1 %v1272_v50  ;;  %v550_v50 = vld [vmem:[#allocation10 + $0x10] sm:$0xff] }
  0xa2   :  { %1014 = vmatmul.mubr.f32.vlgmr.msra.gmra.mrb[0].mxu0 %v151_v47  ;;  %1298 = vmatprep.subr.bf16.mxu1 %v1606_v0  ;;  %v548_v47 = vld [vmem:[#allocation10] sm:$0xff]  ;;  %v1326_v52 = vpack.c.bf16 %v551_v51, %v550_v50 }
  0xa3   :  { %1083 = vmatprep.mubr.msk.f32.mxu0 %vm1607_vm0, %v1608_v1  ;;  %1276 = vmatpush3.bf16.msra.mxu0 %v1275_v53  ;;  %v1323_v49 = vpack.c.bf16 %v549_v48, %v548_v47  ;;  %v552_v53 = vld [vmem:[#allocation10 + $0x20] sm:$0xff] }
  0xa4   :  { %1277 = vmatprep.subr.bf16.mxu0 %v1606_v0  ;;  %v1329_v55 = vpack.c.bf16 %v553_v54, %v552_v53  ;;  %v545_v53 = vld [vmem:[%s1965_s28] sm:$0xff] }
  0xa7   :  { %1279 = vmatpush3.bf16.msra.mxu0 %v1278_v56  ;;  %v554_v56 = vld [vmem:[#allocation10 + $0x30] sm:$0xff] }
  0xa8   :  { %1280 = vmatprep.subr.bf16.mxu0 %v1606_v0  ;;  %v1332_v58 = vpack.c.bf16 %v555_v57, %v554_v56  ;;  %v656_v57 = vld [vmem:[#allocation11 + $0x70] sm:$0xff] }
  0xab   :  { %1282 = vmatpush3.bf16.msra.mxu0 %v1281_v59  ;;  %v556_v59 = vld [vmem:[#allocation10 + $0x40] sm:$0xff] }
  0xac   :  { %1283 = vmatprep.subr.bf16.mxu0 %v1606_v0  ;;  %v1335_v61 = vpack.c.bf16 %v557_v60, %v556_v59  ;;  %v736_v60 = vld [vmem:[#allocation13] sm:$0xff] }
  0xaf   :  { %1285 = vmatpush3.bf16.msra.mxu0 %v1284_v62  ;;  %v558_v62 = vld [vmem:[#allocation10 + $0x50] sm:$0xff] }
  0xb0   :  { %1286 = vmatprep.subr.bf16.mxu0 %v1606_v0  ;;  %v1338_v2 = vpack.c.bf16 %v559_v63, %v558_v62  ;;  %v738_v62 = vld [vmem:[#allocation13 + $0x10] sm:$0xff] }
  0xb3   :  { %1288 = vmatpush3.bf16.msra.mxu0 %v1287_v3  ;;  %v560_v3 = vld [vmem:[#allocation10 + $0x60] sm:$0xff] }
  0xb4   :  { %1289 = vmatprep.subr.bf16.mxu0 %v1606_v0  ;;  %v1341_v5 = vpack.c.bf16 %v561_v4, %v560_v3  ;;  %v740_v4 = vld [vmem:[#allocation13 + $0x20] sm:$0xff] }
  0xb7   :  { %1291 = vmatpush3.bf16.msra.mxu0 %v1290_v6  ;;  %v562_v6 = vld [vmem:[#allocation10 + $0x70] sm:$0xff] }
  0xb8   :  { %1292 = vmatprep.subr.bf16.mxu0 %v1606_v0  ;;  %v1344_v8 = vpack.c.bf16 %v563_v7, %v562_v6  ;;  %v743_v7 = vld [vmem:[#allocation13 + $0x38] sm:$0xff] }
  0xbb   :  { %1294 = vmatpush3.bf16.msra.mxu0 %v1293_v9  ;;  %v642_v9 = vld [vmem:[#allocation11] sm:$0xff] }
  0xbc   :  { %1295 = vmatprep.subr.bf16.mxu0 %v1606_v0 }
  0xbf   :  { %1297 = vmatpush3.bf16.msra.mxu0 %v1296_v39 }
  0xc0   :  { %1322 = vmatprep.subr.bf16.mxu0 %v1606_v0 }
 0x175   :  { %v241_v13 = vpop.f32.mrb[0].mxu0 }
 0x176   :  { %v242_v14 = vadd.f32 %v855_v10, %v241_v13  ;;  %v1015_v15 = vpop.f32.mrb[1].mxu0  ;;  %v643_v10 = vld [vmem:[#allocation11 + $0x8] sm:$0xff]  ;;  %v645_v13 = vld [vmem:[#allocation11 + $0x18] sm:$0xff] }
 0x177   :  { %v1347_v12 = vpack.c.bf16 %v643_v10, %v642_v9  ;;  %v646_v15 = vld [vmem:[#allocation11 + $0x20] sm:$0xff]  ;;  %v745_v10 = vld [vmem:[#allocation13 + $0x48] sm:$0xff] }
 0x178   :  { %v245_v17 = vmax.f32 %v242_v14, 0.0  ;;  %v1350_v14 = vpack.c.bf16 %v645_v13, %v644_v11  ;;  %v744_v9 = vld [vmem:[#allocation13 + $0x40] sm:$0xff]  ;;  %v747_v13 = vld [vmem:[#allocation13 + $0x58] sm:$0xff] }
 0x179   :  { %v1383_v11 = vpack.c.bf16 %v745_v10, %v744_v9 }
 0x17a   :  { %1049 = vmatmul.mubr.f32.vlgmr.msra.gmra.mrb[0].mxu1 %v245_v17 }
 0x17b   :  { %1300 = vmatpush3.bf16.msra.mxu1 %v1299_v16  ;;  %1118 = vmatprep.mubr.msk.f32.mxu1 %vm1607_vm0, %v1608_v1  ;;  %v647_v16 = vld [vmem:[#allocation11 + $0x28] sm:$0xff] }
 0x17c   :  { %1301 = vmatprep.subr.bf16.mxu1 %v1606_v0  ;;  %v1353_v17 = vpack.c.bf16 %v647_v16, %v646_v15  ;;  %v748_v15 = vld [vmem:[#allocation13 + $0x60] sm:$0xff]  ;;  %v749_v16 = vld [vmem:[#allocation13 + $0x68] sm:$0xff] }
 0x17f   :  { %1303 = vmatpush3.bf16.msra.mxu1 %v1302_v20  ;;  %v1356_v20 = vpack.c.bf16 %v649_v19, %v648_v18  ;;  %v859_v18 = vld [vmem:[%s1955_s11] ss:$0 sm:$0xff] }
 0x180   :  { %1304 = vmatprep.subr.bf16.mxu1 %v1606_v0 }
 0x183   :  { %1306 = vmatpush3.bf16.msra.mxu1 %v1305_v23  ;;  %v1359_v23 = vpack.c.bf16 %v651_v22, %v650_v21 }
 0x184   :  { %1307 = vmatprep.subr.bf16.mxu1 %v1606_v0 }
 0x187   :  { %1309 = vmatpush3.bf16.msra.mxu1 %v1308_v26  ;;  %v1362_v26 = vpack.c.bf16 %v653_v25, %v652_v24  ;;  %v751_v24 = vld [vmem:[#allocation13 + $0x78] sm:$0xff] }
 0x188   :  { %1310 = vmatprep.subr.bf16.mxu1 %v1606_v0 }
 0x18b   :  { %1312 = vmatpush3.bf16.msra.mxu1 %v1311_v29  ;;  %v1365_v29 = vpack.c.bf16 %v655_v28, %v654_v27 }
 0x18c   :  { %1313 = vmatprep.subr.bf16.mxu1 %v1606_v0 }
 0x18f   :  { %1315 = vmatpush3.bf16.msra.mxu1 %v1314_v32 }
 0x190   :  { %1316 = vmatprep.subr.bf16.mxu1 %v1606_v0 }
 0x193   :  { %1318 = vmatpush3.bf16.msra.mxu1 %v1317_v35 }
 0x194   :  { %1319 = vmatprep.subr.bf16.mxu1 %v1606_v0 }
 0x197   :  { %1321 = vmatpush3.bf16.msra.mxu1 %v1320_v41 }
 0x198   :  { %1346 = vmatprep.subr.bf16.mxu1 %v1606_v0 }
 0x24d   :  { %v335_v43 = vpop.f32.mrb[0].mxu1 }
 0x24e   :  { %v336_v44 = vadd.f32 %v856_v42, %v335_v43  ;;  %v1050_v45 = vpop.f32.mrb[1].mxu1 }
 0x250   :  { %v339_v46 = vmax.f32 %v336_v44, 0.0 }
 0x252   :  { %1084 = vmatmul.mubr.f32.vlgmr.msra.gmra.mrb[2].mxu0 %v339_v46  ;;  %1119 = vmatmul.mubr.f32.vlgmr.msra.gmra.mrb[2].mxu1 %v339_v46 }
 0x253   :  { %1153 = vmatprep.mubr.msk.f32.mxu0 %vm1607_vm0, %v1608_v1  ;;  %1188 = vmatprep.mubr.msk.f32.mxu1 %vm1607_vm0, %v1608_v1 }
 0x254   :  { %1324 = vmatpush3.bf16.msra.mxu0 %v1323_v49  ;;  %1348 = vmatpush3.bf16.msra.mxu1 %v1347_v12  ;;  %v746_v12 = vld [vmem:[#allocation13 + $0x50] sm:$0xff] }
 0x255   :  { %1325 = vmatprep.subr.bf16.mxu0 %v1606_v0  ;;  %1349 = vmatprep.subr.bf16.mxu1 %v1606_v0 }
 0x258   :  { %1327 = vmatpush3.bf16.msra.mxu0 %v1326_v52  ;;  %1351 = vmatpush3.bf16.msra.mxu1 %v1350_v14  ;;  %v1386_v14 = vpack.c.bf16 %v747_v13, %v746_v12 }
 0x259   :  { %1328 = vmatprep.subr.bf16.mxu0 %v1606_v0  ;;  %1352 = vmatprep.subr.bf16.mxu1 %v1606_v0 }
 0x25c   :  { %1330 = vmatpush3.bf16.msra.mxu0 %v1329_v55  ;;  %1354 = vmatpush3.bf16.msra.mxu1 %v1353_v17  ;;  %v1389_v17 = vpack.c.bf16 %v749_v16, %v748_v15 }
 0x25d   :  { %1331 = vmatprep.subr.bf16.mxu0 %v1606_v0  ;;  %1355 = vmatprep.subr.bf16.mxu1 %v1606_v0 }
 0x260   :  { %1333 = vmatpush3.bf16.msra.mxu0 %v1332_v58  ;;  %1357 = vmatpush3.bf16.msra.mxu1 %v1356_v20  ;;  %v657_v58 = vld [vmem:[#allocation11 + $0x78] sm:$0xff] }
 0x261   :  { %1334 = vmatprep.subr.bf16.mxu0 %v1606_v0  ;;  %1358 = vmatprep.subr.bf16.mxu1 %v1606_v0  ;;  %v1368_v59 = vpack.c.bf16 %v657_v58, %v656_v57 }
 0x264   :  { %1336 = vmatpush3.bf16.msra.mxu0 %v1335_v61  ;;  %1360 = vmatpush3.bf16.msra.mxu1 %v1359_v23  ;;  %v737_v61 = vld [vmem:[#allocation13 + $0x8] sm:$0xff]  ;;  %v750_v23 = vld [vmem:[#allocation13 + $0x70] sm:$0xff] }
 0x265   :  { %1337 = vmatprep.subr.bf16.mxu0 %v1606_v0  ;;  %1361 = vmatprep.subr.bf16.mxu1 %v1606_v0  ;;  %v1371_v63 = vpack.c.bf16 %v737_v61, %v736_v60  ;;  %v1392_v25 = vpack.c.bf16 %v751_v24, %v750_v23 }
 0x268   :  { %1339 = vmatpush3.bf16.msra.mxu0 %v1338_v2  ;;  %1363 = vmatpush3.bf16.msra.mxu1 %v1362_v26  ;;  %v739_v2 = vld [vmem:[#allocation13 + $0x18] sm:$0xff]  ;;  %v860_v26 = vld [vmem:[%s1957_s13] ss:$0 sm:$0xff] }
 0x269   :  { %1340 = vmatprep.subr.bf16.mxu0 %v1606_v0  ;;  %1364 = vmatprep.subr.bf16.mxu1 %v1606_v0  ;;  %v1374_v3 = vpack.c.bf16 %v739_v2, %v738_v62 }
 0x26c   :  { %1342 = vmatpush3.bf16.msra.mxu0 %v1341_v5  ;;  %1366 = vmatpush3.bf16.msra.mxu1 %v1365_v29  ;;  %v741_v5 = vld [vmem:[#allocation13 + $0x28] sm:$0xff] }
 0x26d   :  { %1343 = vmatprep.subr.bf16.mxu0 %v1606_v0  ;;  %1367 = vmatprep.subr.bf16.mxu1 %v1606_v0  ;;  %v1377_v6 = vpack.c.bf16 %v741_v5, %v740_v4 }
 0x270   :  { %1345 = vmatpush3.bf16.msra.mxu0 %v1344_v8  ;;  %1369 = vmatpush3.bf16.msra.mxu1 %v1368_v59 }
 0x271   :  { %1370 = vmatprep.subr.bf16.mxu0 %v1606_v0 }
 0x325   :  { %v429_v32 = vpop.f32.mrb[2].mxu0  ;;  %v522_v33 = vpop.f32.mrb[2].mxu1 }
 0x326   :  { %v430_v34 = vadd.f32 %v857_v30, %v429_v32  ;;  %v523_v35 = vadd.f32 %v858_v31, %v522_v33  ;;  %v1085_v36 = vpop.f32.mrb[3].mxu0  ;;  %v1120_v37 = vpop.f32.mrb[3].mxu1  ;;  %v861_v30 = vld [vmem:[%s1959_s15] ss:$0 sm:$0xff] }
 0x328   :  { %831 = vst [vmem:[%s1961_s17 + $0x8] sm:$0xff] %v430_v34  ;;  %v529_v38 = vand.u32 2147483647, %v523_v35  ;;  %v526_v49 = vmax.f32 %v523_v35, 0.0  ;;  %vm527_vm2 = vcmp.ne.f32.partialorder %v523_v35, %v523_v35 }
 0x32a   :  { %v530_v39 = vsub.f32 0.0, %v529_v38 }
 0x32c   :  { %v531_v40 = vmul.f32 1.442695, %v530_v39 }
 0x32e   :  { %1407 = vpow2.f32 %v531_v40 }
 0x338   :  { %v1408_v41 = vpop.eup %1407 }
 0x339   :  { %v533_v42 = vadd.f32 1.0, %v1408_v41  ;;  %v536_v43 = vmul.f32 -0.5, %v1408_v41  ;;  %v539_v45 = vand.u32 2147483647, %v1408_v41 }
 0x33b   :  { %1409 = vlog2.f32 %v533_v42  ;;  %v537_v44 = vadd.f32 1.0, %v536_v43  ;;  %vm540_vm1 = vcmp.lt.f32.partialorder %v539_v45, 0.0004427343 }
 0x33d   :  { %v538_v48 = vmul.f32 %v1408_v41, %v537_v44 }
 0x345   :  { %v1410_v46 = vpop.eup %1409 }
 0x346   :  { %v535_v47 = vmul.f32 0.6931472, %v1410_v46 }
 0x348   :  { %v541_v50 = vsel %vm540_vm1, %v538_v48, %v535_v47 }
 0x349   :  { %v542_v51 = vadd.f32 %v541_v50, %v526_v49 }
 0x34b   :  { %v543_v52 = vsel %vm527_vm2, %v523_v35, %v542_v51 }
 0x34c   :  { %v544_v54 = vadd.f32 1e-08, %v543_v52 }
 0x34e   :  { %832 = vst [vmem:[%s1961_s17 + $0x10] sm:$0xff] %v544_v54  ;;  %v546_v55 = vmul.f32 %v545_v53, %v544_v54 }
 0x350   :  { %v547_v56 = vadd.f32 %v546_v55, %v430_v34 }
 0x352   :  { %1154 = vmatmul.mubr.f32.vlgmr.msra.gmra.mrb[4].mxu0 %v547_v56  ;;  %830 = vst [vmem:[%s1961_s17] sm:$0xff] %v547_v56 }
 0x353   :  { %1223 = vmatprep.mubr.msk.f32.mxu0 %vm1607_vm0, %v1608_v1  ;;  %1372 = vmatpush3.bf16.msra.mxu0 %v1371_v63  ;;  %v742_v1 = vld [vmem:[#allocation13 + $0x30] sm:$0xff] }
 0x354   :  { %1373 = vmatprep.subr.bf16.mxu0 %v1606_v0  ;;  %v1380_v8 = vpack.c.bf16 %v743_v7, %v742_v1 }
 0x357   :  { %1375 = vmatpush3.bf16.msra.mxu0 %v1374_v3 }
 0x358   :  { %1376 = vmatprep.subr.bf16.mxu0 %v1606_v0 }
 0x35b   :  { %1378 = vmatpush3.bf16.msra.mxu0 %v1377_v6 }
 0x35c   :  { %1379 = vmatprep.subr.bf16.mxu0 %v1606_v0 }
 0x35f   :  { %1381 = vmatpush3.bf16.msra.mxu0 %v1380_v8 }
 0x360   :  { %1382 = vmatprep.subr.bf16.mxu0 %v1606_v0 }
 0x363   :  { %1384 = vmatpush3.bf16.msra.mxu0 %v1383_v11 }
 0x364   :  { %1385 = vmatprep.subr.bf16.mxu0 %v1606_v0 }
 0x367   :  { %1387 = vmatpush3.bf16.msra.mxu0 %v1386_v14 }
 0x368   :  { %1388 = vmatprep.subr.bf16.mxu0 %v1606_v0 }
 0x36b   :  { %1390 = vmatpush3.bf16.msra.mxu0 %v1389_v17 }
 0x36c   :  { %1391 = vmatprep.subr.bf16.mxu0 %v1606_v0 }
 0x36f   :  { %1393 = vmatpush3.bf16.msra.mxu0 %v1392_v25 }
 0x425   :  { %v637_v19 = vpop.f32.mrb[4].mxu0 }
 0x426   :  { %v638_v20 = vadd.f32 %v859_v18, %v637_v19  ;;  %v1155_v21 = vpop.f32.mrb[5].mxu0 }
 0x428   :  { %v641_v22 = vmax.f32 %v638_v20, 0.0 }
 0x42a   :  { %1189 = vmatmul.mubr.f32.vlgmr.msra.gmra.mrb[4].mxu1 %v641_v22 }
 0x4fd   :  { %v731_v27 = vpop.f32.mrb[4].mxu1 }
 0x4fe   :  { %v732_v28 = vadd.f32 %v860_v26, %v731_v27  ;;  %v1190_v0 = vpop.f32.mrb[5].mxu1 }
 0x500   :  { %v735_v29 = vmax.f32 %v732_v28, 0.0 }
 0x502   :  { %1224 = vmatmul.mubr.f32.vlgmr.msra.gmra.mrb[6].mxu0 %v735_v29 }
 0x5d5   :  { %v825_v31 = vpop.f32.mrb[6].mxu0 }
 0x5d6   :  { %v826_v32 = vadd.f32 %v861_v30, %v825_v31  ;;  %v1225_v33 = vpop.f32.mrb[7].mxu0 }
 0x5d8   :  { %829 = vst [vmem:[#allocation14] sm:$0xff] %v826_v32 }
 0x5d9   :  { %1576 = shalt.err (!%p1573_p4)
}
 0x5da   :  { %s1577_s22 = scalar_lea.hbm %s1960_s16, 128 }
 0x5db   :  { %p1578_p5 = scmp.ne.s32.totalorder %s1960_s16, %s1577_s22  ;;  %p1581_p6 = scmp.lt.u32.totalorder %s1577_s22, %s1960_s16 }
 0x5dd   :  { %p1583_p7 = pnand %p1581_p6, %p1578_p5 }
 0x5df   :  { %1586 = shalt.err (!%p1583_p7)
}
 0x5e0   :  { %842 = dma.vmem_to_hbm [thread:$0]  %s840_s27, 128, %s1960_s16, [#allocation4]  }
 0x5e1   :  { %1595 = dma.done.wait [#allocation4], 128  }
 0x5e2   :  { %1596 = vsyncadd [#allocation4], 4294967168 }
 0x5e3   :  { %850 = vsyncpa [#allocation3], 1 }
 0x5e4   :  { %851 = vsyncpa [#allocation6], 1 }
 0x5e5   :  { %852 = vsyncpa [#allocation9], 1 }
 0x5e6   :  { %853 = vsyncpa [#allocation12], 1 }
 0x5e7   :  { %854 = vsyncpa [#allocation4], 1 }

</bundles_post_ra>
